<compile_context>
chip_gen: v5e
topology: v5e:2x2
jax: 0.10.0
libtpu: 0.0.40
codegen_flags: <defaults>
</compile_context>

<pallas_src>
import numpy as np
import jax
import jax.numpy as jnp
from jax.experimental import pallas as pl
from jax.experimental.pallas import tpu as pltpu


def _cdiv(a, b):
    return -(-a // b)


def _round_up(x, m):
    return ((x + m - 1) // m) * m


def _pick_tile_n(num_patches, batch, requested):
    """Patch-tile size: big (fewer grid steps), sublane-friendly, and split so
    the grid has >= 2 steps when batch alone can't feed both TensorCores."""
    n = num_patches
    t = max(16, min(_round_up(requested, 16), _round_up(n, 16)))
    if t >= n:
        t = n  # single full-extent tile is always a legal block shape
        if batch == 1 and n >= 32:
            t = _round_up(_cdiv(n, 2), 16)  # ensure >= 2 grid steps for v7x megacore
    return t


# ---------------------------------------------------------------------------
# Pallas kernel: one (batch, patch-tile) step of the patch-embedding GEMM.
# The unfold (c, p) -> K happens here as a per-channel accumulation loop.
# ---------------------------------------------------------------------------
def patch_embed_kernel(x_ref, w_ref, b_ref, o_ref):
    # x_ref: (1, C, tile_n, P) f32   raw voxels (read from HBM exactly once)
    # w_ref: (C, P, D)         bf16  conv weight, resident across the grid
    # b_ref: (1, D)            f32
    # o_ref: (1, tile_n, D)    out_dtype
    C = w_ref.shape[0]
    # Cast activations to the weight dtype in VMEM right before the MXU dot;
    # accumulate in f32.  C is a tiny static int (1..4), so a Python loop.
    acc = jnp.dot(x_ref[0, 0].astype(w_ref.dtype), w_ref[0],
                  preferred_element_type=jnp.float32)
    for c in range(1, C):
        acc += jnp.dot(x_ref[0, c].astype(w_ref.dtype), w_ref[c],
                       preferred_element_type=jnp.float32)
    o_ref[0] = (acc + b_ref[...]).astype(o_ref.dtype)


# ---------------------------------------------------------------------------
# wrapper: free reshape, pick tiles, call the kernel
# ---------------------------------------------------------------------------
def patch_embed_1d(x, conv_w, conv_b, patch_size, *, tile_n=2048,
                   use_bf16=True, out_dtype=None):
    """x: (B, C, V); conv_w: (D, C, P); conv_b: (D,)  ->  (B, N, D).

    out_dtype defaults to x.dtype (f32) to match the PyTorch module; pass
    jnp.bfloat16 to halve the dominant HBM output stream for downstream bf16
    consumers.
    """
    B, C, V = x.shape
    D = conv_w.shape[0]
    P = patch_size
    N = V // P                              # Conv1d(stride=kernel) drops remainder
    if out_dtype is None:
        out_dtype = x.dtype

    if V != N * P:                          # rare ragged case only
        x = x[:, :, : N * P]
    x4 = x.reshape(B, C, N, P)              # pure reshape: no HBM copy

    # Small weight: (D, C, P) -> (C, P, D); casting it here is negligible bytes.
    wm = conv_w.transpose(1, 2, 0).astype(jnp.bfloat16 if use_bf16 else jnp.float32)
    bm = conv_b.reshape(1, D).astype(jnp.float32)

    tn = _pick_tile_n(N, B, tile_n)
    grid = (B, _cdiv(N, tn))

    out = pl.pallas_call(
        patch_embed_kernel,
        out_shape=jax.ShapeDtypeStruct((B, N, D), out_dtype),
        grid_spec=pltpu.PrefetchScalarGridSpec(
            num_scalar_prefetch=0,
            grid=grid,
            in_specs=[
                # Rectangular window of raw voxels: fused unfold, no wrapper copy.
                pl.BlockSpec((1, C, tn, P), lambda b, j: (b, 0, j, 0)),
                pl.BlockSpec((C, P, D), lambda b, j: (0, 0, 0)),   # weight, resident
                pl.BlockSpec((1, D), lambda b, j: (0, 0)),         # bias, resident
            ],
            # Lane-dense output: full D on the lane axis, written as (B, N, D).
            out_specs=pl.BlockSpec((1, tn, D), lambda b, j: (b, j, 0)),
        ),
        compiler_params=pltpu.CompilerParams(
            dimension_semantics=("parallel", "parallel"),
            vmem_limit_bytes=32 * 1024 * 1024,
        ),
    )(x4, wm, bm)

    return out


# ---------------------------------------------------------------------------
# deterministic parameter construction (matches nn.Conv1d shapes / init range)
# ---------------------------------------------------------------------------
def init_params(key, *, patch_size, in_chans, embed_dim):
    k_w, k_b = jax.random.split(key)
    fan_in = in_chans * patch_size
    limit = float(np.sqrt(1.0 / fan_in))
    conv_w = jax.random.uniform(
        k_w, (embed_dim, in_chans, patch_size), jnp.float32, -limit, limit
    )
    conv_b = jax.random.uniform(k_b, (embed_dim,), jnp.float32, -limit, limit)
    return conv_w, conv_b


# ---------------------------------------------------------------------------
if __name__ == "__main__":
    # small but forward-consistent shapes
    B, in_chans = 2, 4
    num_voxels, patch_size = 64, 16          # -> num_patches = 4
    embed_dim = 128                          # lane-dense output dim

    root = jax.random.PRNGKey(0)
    k_in, k_par = jax.random.split(root)

    x = jax.random.normal(k_in, (B, in_chans, num_voxels), jnp.float32)
    conv_w, conv_b = init_params(
        k_par, patch_size=patch_size, in_chans=in_chans, embed_dim=embed_dim
    )

    out = patch_embed_1d(x, conv_w, conv_b, patch_size)
    out = jax.block_until_ready(out)

    # pure-JAX f32 reference (Conv1d(kernel=stride=P) + transpose)
    N = num_voxels // patch_size
    ref = (
        jnp.einsum(
            "bcnp,dcp->bnd",
            x[:, :, : N * patch_size].reshape(B, in_chans, N, patch_size),
            conv_w,
        )
        + conv_b[None, None, :]
    )

    assert out.shape == (B, N, embed_dim), out.shape
    assert bool(jnp.all(jnp.isfinite(out)))
    # bf16 MXU operands / f32 accumulation -> loose-but-tight-enough tolerance
    np.testing.assert_allclose(np.asarray(out), np.asarray(ref), rtol=2e-2, atol=2e-2)
    print("KERNEL_OK")
</pallas_src>

<mosaic_0001>
module attributes {stable_mosaic.version = 11 : i64} {
  func.func @patch_embed_kernel(%arg0: i32, %arg1: i32, %arg2: memref<1x4x4x16xf32, #tpu.memory_space<vmem>>, %arg3: memref<4x16x128xbf16, #tpu.memory_space<vmem>>, %arg4: memref<1x128xf32, #tpu.memory_space<vmem>>, %arg5: memref<1x4x128xf32, #tpu.memory_space<vmem>>) attributes {dimension_semantics = [#tpu.dimension_semantics<parallel>, #tpu.dimension_semantics<parallel>], iteration_bounds = array<i64: 2, 1>, scalar_prefetch = 0 : i64, scratch_operands = 0 : i64, tpu.core_type = #tpu.core_type<tc>, window_params = [{transform_indices = @transform_0, window_bounds = array<i64: 1, 4, 4, 16>}, {pipeline_mode = #tpu.pipeline_mode<synchronous>, transform_indices = @transform_1, window_bounds = array<i64: 4, 16, 128>}, {pipeline_mode = #tpu.pipeline_mode<synchronous>, transform_indices = @transform_2, window_bounds = array<i64: 1, 128>}, {transform_indices = @transform_3, window_bounds = array<i64: 1, 4, 128>}]} {
    %c0 = arith.constant 0 : index
    %c0_0 = arith.constant 0 : index
    %c0_1 = arith.constant 0 : index
    %c0_2 = arith.constant 0 : index
    %0 = vector.load %arg2[%c0, %c0_0, %c0_1, %c0_2] : memref<1x4x4x16xf32, #tpu.memory_space<vmem>>, vector<1x1x4x16xf32>
    %1 = vector.shape_cast %0 : vector<1x1x4x16xf32> to vector<4x16xf32>
    %2 = arith.truncf %1 : vector<4x16xf32> to vector<4x16xbf16>
    %c0_3 = arith.constant 0 : index
    %c0_4 = arith.constant 0 : index
    %c0_5 = arith.constant 0 : index
    %3 = vector.load %arg3[%c0_3, %c0_4, %c0_5] : memref<4x16x128xbf16, #tpu.memory_space<vmem>>, vector<1x16x128xbf16>
    %4 = vector.shape_cast %3 : vector<1x16x128xbf16> to vector<16x128xbf16>
    %cst = arith.constant dense<0.000000e+00> : vector<4x128xf32>
    %5 = tpu.matmul %2, %4, %cst {dimension_numbers = #tpu.dot_dimension_numbers<[1], [0], [0], [1], [0, 0, 1, 1], [], []>} : vector<4x16xbf16>, vector<16x128xbf16>, vector<4x128xf32> -> vector<4x128xf32>
    %c0_6 = arith.constant 0 : index
    %c1 = arith.constant 1 : index
    %c0_7 = arith.constant 0 : index
    %c0_8 = arith.constant 0 : index
    %6 = vector.load %arg2[%c0_6, %c1, %c0_7, %c0_8] : memref<1x4x4x16xf32, #tpu.memory_space<vmem>>, vector<1x1x4x16xf32>
    %7 = vector.shape_cast %6 : vector<1x1x4x16xf32> to vector<4x16xf32>
    %8 = arith.truncf %7 : vector<4x16xf32> to vector<4x16xbf16>
    %c1_9 = arith.constant 1 : index
    %c0_10 = arith.constant 0 : index
    %c0_11 = arith.constant 0 : index
    %9 = vector.load %arg3[%c1_9, %c0_10, %c0_11] : memref<4x16x128xbf16, #tpu.memory_space<vmem>>, vector<1x16x128xbf16>
    %10 = vector.shape_cast %9 : vector<1x16x128xbf16> to vector<16x128xbf16>
    %cst_12 = arith.constant dense<0.000000e+00> : vector<4x128xf32>
    %11 = tpu.matmul %8, %10, %cst_12 {dimension_numbers = #tpu.dot_dimension_numbers<[1], [0], [0], [1], [0, 0, 1, 1], [], []>} : vector<4x16xbf16>, vector<16x128xbf16>, vector<4x128xf32> -> vector<4x128xf32>
    %12 = arith.addf %5, %11 : vector<4x128xf32>
    %c0_13 = arith.constant 0 : index
    %c2 = arith.constant 2 : index
    %c0_14 = arith.constant 0 : index
    %c0_15 = arith.constant 0 : index
    %13 = vector.load %arg2[%c0_13, %c2, %c0_14, %c0_15] : memref<1x4x4x16xf32, #tpu.memory_space<vmem>>, vector<1x1x4x16xf32>
    %14 = vector.shape_cast %13 : vector<1x1x4x16xf32> to vector<4x16xf32>
    %15 = arith.truncf %14 : vector<4x16xf32> to vector<4x16xbf16>
    %c2_16 = arith.constant 2 : index
    %c0_17 = arith.constant 0 : index
    %c0_18 = arith.constant 0 : index
    %16 = vector.load %arg3[%c2_16, %c0_17, %c0_18] : memref<4x16x128xbf16, #tpu.memory_space<vmem>>, vector<1x16x128xbf16>
    %17 = vector.shape_cast %16 : vector<1x16x128xbf16> to vector<16x128xbf16>
    %cst_19 = arith.constant dense<0.000000e+00> : vector<4x128xf32>
    %18 = tpu.matmul %15, %17, %cst_19 {dimension_numbers = #tpu.dot_dimension_numbers<[1], [0], [0], [1], [0, 0, 1, 1], [], []>} : vector<4x16xbf16>, vector<16x128xbf16>, vector<4x128xf32> -> vector<4x128xf32>
    %19 = arith.addf %12, %18 : vector<4x128xf32>
    %c0_20 = arith.constant 0 : index
    %c3 = arith.constant 3 : index
    %c0_21 = arith.constant 0 : index
    %c0_22 = arith.constant 0 : index
    %20 = vector.load %arg2[%c0_20, %c3, %c0_21, %c0_22] : memref<1x4x4x16xf32, #tpu.memory_space<vmem>>, vector<1x1x4x16xf32>
    %21 = vector.shape_cast %20 : vector<1x1x4x16xf32> to vector<4x16xf32>
    %22 = arith.truncf %21 : vector<4x16xf32> to vector<4x16xbf16>
    %c3_23 = arith.constant 3 : index
    %c0_24 = arith.constant 0 : index
    %c0_25 = arith.constant 0 : index
    %23 = vector.load %arg3[%c3_23, %c0_24, %c0_25] : memref<4x16x128xbf16, #tpu.memory_space<vmem>>, vector<1x16x128xbf16>
    %24 = vector.shape_cast %23 : vector<1x16x128xbf16> to vector<16x128xbf16>
    %cst_26 = arith.constant dense<0.000000e+00> : vector<4x128xf32>
    %25 = tpu.matmul %22, %24, %cst_26 {dimension_numbers = #tpu.dot_dimension_numbers<[1], [0], [0], [1], [0, 0, 1, 1], [], []>} : vector<4x16xbf16>, vector<16x128xbf16>, vector<4x128xf32> -> vector<4x128xf32>
    %26 = arith.addf %19, %25 : vector<4x128xf32>
    %c0_27 = arith.constant 0 : index
    %c0_28 = arith.constant 0 : index
    %27 = vector.load %arg4[%c0_27, %c0_28] : memref<1x128xf32, #tpu.memory_space<vmem>>, vector<1x128xf32>
    %28 = vector.broadcast %27 : vector<1x128xf32> to vector<4x128xf32>
    %29 = arith.addf %26, %28 : vector<4x128xf32>
    %c0_29 = arith.constant 0 : index
    %c0_30 = arith.constant 0 : index
    %c0_31 = arith.constant 0 : index
    %30 = vector.load %arg5[%c0_29, %c0_30, %c0_31] : memref<1x4x128xf32, #tpu.memory_space<vmem>>, vector<1x4x128xf32>
    %31 = vector.shape_cast %30 : vector<1x4x128xf32> to vector<4x128xf32>
    %32 = vector.shape_cast %29 : vector<4x128xf32> to vector<1x4x128xf32>
    tpu.vector_store %arg5[%c0_29, %c0_30, %c0_31], %32 {strides = array<i32>} : memref<1x4x128xf32, #tpu.memory_space<vmem>>, vector<1x4x128xf32>,
    return
  }
  func.func @transform_0(%arg0: i32, %arg1: i32) -> (i32, i32, i32, i32) {
    %c0_i32 = arith.constant 0 : i32
    %c0_i32_0 = arith.constant 0 : i32
    %c0_i32_1 = arith.constant 0 : i32
    return %arg0, %c0_i32, %arg1, %c0_i32_0 : i32, i32, i32, i32
  }
  func.func @transform_1(%arg0: i32, %arg1: i32) -> (i32, i32, i32) {
    %c0_i32 = arith.constant 0 : i32
    %c0_i32_0 = arith.constant 0 : i32
    %c0_i32_1 = arith.constant 0 : i32
    %c0_i32_2 = arith.constant 0 : i32
    return %c0_i32, %c0_i32_0, %c0_i32_1 : i32, i32, i32
  }
  func.func @transform_2(%arg0: i32, %arg1: i32) -> (i32, i32) {
    %c0_i32 = arith.constant 0 : i32
    %c0_i32_0 = arith.constant 0 : i32
    %c0_i32_1 = arith.constant 0 : i32
    return %c0_i32, %c0_i32_0 : i32, i32
  }
  func.func @transform_3(%arg0: i32, %arg1: i32) -> (i32, i32, i32) {
    %c0_i32 = arith.constant 0 : i32
    %c0_i32_0 = arith.constant 0 : i32
    return %arg0, %arg1, %c0_i32 : i32, i32, i32
  }
}

</mosaic_0001>

<bundles_post_ra>
// kernel: tpu_custom_call.1
= control target key start
LH: loop header
LB: loop body
LE: loop exit
PB: predicated region body
PF: predicated region fallthrough
CT: control target
= control target key end

     0   :  { %s903_s0 = inlined_call_operand.hbm [shape: f32[2,4,4,16], index: 0, kind: input, shape index: {}]   ;;  %s904_s1 = inlined_call_operand.hbm [shape: bf16[4,16,128], index: 1, kind: input, shape index: {}]   ;;  %s905_s2 = inlined_call_operand.vmem [shape: f32[1,128], index: 2, kind: input, shape index: {}]   ;;  %s906_s3 = inlined_call_operand.hbm [shape: f32[2,4,128], index: 3, kind: output, shape index: {}]  }
   0x1   :  { %908 = sst [smem:[#allocation11_spill]] %s904_s1 }
   0x2   :  { %8 = vsyncpa [#allocation3], 0 }
   0x3   :  { %10 = vsyncpa [#allocation3 + $0x1], 0 }
   0x4   :  { %11 = vsyncpa [#allocation6], 0 }
   0x5   :  { %12 = vsyncpa [#allocation4], 0 }
   0x6   :  { %14 = vsyncpa [#allocation4 + $0x1], 0  ;;  %s744_s12 = smov 0   ;;  %s746_s13 = smov 0  }
   0x7   :  { %s748_s14 = smov 0   ;;  %s750_s15 = smov 0  }
   0x8   :  { %s752_s16 = smov 0   ;;  %s754_s17 = smov 0  }
   0x9 LB: > { %s453_s18 = sadd.s32 4294967295, %s719_s17   ;;  %s454_s19 = sadd.s32 4294967294, %s719_s17   ;;  %s719_s17 = sphi %s754_s17, %s20_s17   ;;  %s715_s16 = sphi %s752_s16, %s922_s16   ;;  %s711_s15 = sphi %s750_s15, %s921_s15   ;;  %s707_s14 = sphi %s748_s14, %s920_s14   ;;  %s703_s13 = sphi %s746_s13, %s919_s13   ;;  %s699_s12 = sphi %s744_s12, %s918_s12  }
   0xa   : > { %p54_p0 = scmp.ne.s32.totalorder %s703_s13, %s699_s12  ;;  %p778_p1 = scmp.eq.s32.totalorder %s453_s18, 0 }
   0xb   : > { %p782_p2 = scmp.eq.s32.totalorder %s453_s18, 1  ;;  %p128_p3 = scmp.eq.s32.totalorder %s454_s19, 1 }
   0xc   : > { %p788_p4 = por %p778_p1, %p54_p0  ;;  %p455_p5 = scmp.ge.s32.totalorder %s719_s17, 1 }
   0xd   : > { %p793_p6 = por %p128_p3, %p54_p0  ;;  %p135_p7 = scmp.lt.s32.totalorder %s719_s17, 3 }
   0xe   : > { %s913_s1 = sld [smem:[#allocation11_spill]]  ;;  %s721_s28 = smov [#allocation5]  }
   0xf   : > { %p801_p8 = pnand %p455_p5, %p135_p7  ;;  %s148_s29 = sshll.u32 %s721_s28, 4  ;;  %s149_s29 = int_to_ptr.vmem [resolvable:$true] %s148_s29 }
  0x10   : > { %p457_p11 = scmp.ge.s32.totalorder %s719_s17, 2  ;;  %s907_s30 = smov 64  }
  0x11   : > { %p505_p9 = pneg %p801_p8  ;;  %s723_s4 = smov 4  }
  0x12   : > { %s32_s5 = sadd.s32 1, %s715_s16  ;;  %s41_s6 = sadd.s32 1, %s707_s14 }
  0x13   : > { %p506_p10 = pnand %p505_p9, %p778_p1  ;;  %p34_p12 = scmp.ge.s32.totalorder %s32_s5, 2 }
  0x14   : > { %s146_s26 = sshll.u32 %s913_s1, 4  ;;  %p48_p13 = scmp.ne.s32.totalorder %s707_s14, %s703_s13  ;;  %s147_s26 = int_to_ptr.hbm [resolvable:$true] %s146_s26 }
  0x15   : > { %508 = dma.hbm_to_vmem [thread:$0]  (!%p506_p10), %s147_s26, 512, %s149_s29, [#allocation6], %s907_s30, %s907_s30, %s723_s4  }
  0x16   : > { %p49_p0 = scmp.eq.s32.totalorder %s719_s17, 0  ;;  %s924_s5 = smov (%p34_p12, %s32_s5), 0 }
  0x17   : > { %p826_p5 = por %p782_p2, %p48_p13  ;;  %s36_s9 = ssub.s32 %s715_s16, %s924_s5 }
  0x18   : > { %p820_p3 = por %p49_p0, %p48_p13  ;;  %p518_p7 = scmp.lt.s32.totalorder %s719_s17, 2 }
  0x19   : > { %p39_p9 = scmp.eq.s32.totalorder %s36_s9, 0  ;;  %s165_s10 = sand.u32 1, %s707_s14  }
  0x1a   : > { %s458_s11 = sshll.u32 %s165_s10, 4  ;;  %s492_s19 = sshll.u32 %s715_s16, 4 }
  0x1b   : > { %s835_s18 = scalar_select %p39_p9, %s707_s14, %s41_s6  }
  0x1c   : > { %s175_s26 = scalar_lea.hbm %s903_s0, %s492_s19  ;;  %s169_s28 = scalar_lea.vmem [#allocation2], %s458_s11 }
  0x1d   : > { %s178_s29 = sshll.u32 %s169_s28, 4  ;;  %s176_s21 = sshll.u32 %s175_s26, 4  ;;  %s179_s29 = int_to_ptr.vmem [resolvable:$true] %s178_s29  ;;  %s177_s21 = int_to_ptr.hbm [resolvable:$true] %s176_s21 }
  0x1e   : > { %p510_p2 = pnand %p518_p7, %p820_p3  ;;  %s166_s30 = scalar_lea.sflag [#allocation3], %s165_s10 }
  0x1f   : > { %s917_s1 = smov 64   ;;  %190 = sbr.rel (%p801_p8) target bundleno = 187 (0xbb), region = 32 }
  0x20   : > { %512 = dma.hbm_to_vmem [thread:$0]  (!%p510_p2), %s177_s21, 256, %s179_s29, %s166_s30, %s917_s1, %s917_s1, %s723_s4  }
  0x21   : > { %s849_s6 = sand.u32 (!%p801_p8), 1, %s703_s13  }
  0x22   : > { %s462_s9 = sshll.u32 (!%p801_p8), %s849_s6, 4  ;;  %s193_s11 = scalar_lea.sflag (!%p801_p8), [#allocation3], %s849_s6 }
  0x23   : > { %s196_s19 = scalar_lea.vmem (!%p801_p8), [#allocation2], %s462_s9 }
  0x24   : > { %686 = dma.done.wait (%p788_p4), %s193_s11, 256  }
  0x25   : > { %688 = vsyncadd (%p788_p4), %s193_s11, 4294967040 }
  0x26   : > { %690 = dma.done.wait (%p778_p1), [#allocation6], 512  }
  0x27   : > { %692 = vsyncadd (%p778_p1), [#allocation6], 4294966784  ;;  %v494_v0 = vld [vmem:[#allocation5 + $0x8] sm:$0xff]  ;;  %v493_v1 = vld [vmem:[#allocation5] sm:$0xff]  ;;  %vm242_vm0 = vcmask 130048   ;;  %s464_s1 = sshll.u32 %s849_s6, 2 }
  0x28   : > { %v495_v2 = vld [vmem:[#allocation5 + $0x10] sm:$0xff]  ;;  %v496_v3 = vld [vmem:[#allocation5 + $0x18] sm:$0xff]  ;;  %253 = vmatpush.bf16.msra.mxu0 %v494_v0  ;;  %275 = vmatpush.bf16.msra.mxu1 %v493_v1  ;;  %s489_s20 = sshll.u32 %s711_s15, 2  ;;  %v572_v18 = vld [vmem:[%s905_s2] ss:$0 sm:$0xff]  ;;  %s224_s10 = scalar_lea.vmem [#allocation7], %s464_s1 }
  0x29   : > { %v465_v4 = vld [vmem:[%s196_s19 + $0x4] sm:$0xf]  ;;  %v226_v5 = vld [vmem:[%s196_s19] sm:$0xf]  ;;  %v476_v8 = vld [vmem:[%s196_s19 + $0x8] sm:$0xf]  ;;  %303 = vmatpush.bf16.msra.mxu2 %v495_v2  ;;  %332 = vmatpush.bf16.msra.mxu3 %v496_v3  ;;  %s357_s30 = scalar_lea.hbm %s906_s3, %s489_s20 }
  0x2a   : > { %v232_v6 = vpack.c.bf16 %v465_v4, %v465_v4  ;;  %v227_v7 = vpack.c.bf16 %v226_v5, %v226_v5  ;;  %v482_v9 = vld [vmem:[%s196_s19 + $0xc] sm:$0xf]  ;;  %v283_v10 = vpack.c.bf16 %v476_v8, %v476_v8  ;;  %s359_s24 = sshll.u32 %s224_s10, 4  ;;  %s361_s25 = sshll.u32 %s357_s30, 4  ;;  %s360_s24 = int_to_ptr.vmem [resolvable:$true] %s359_s24  ;;  %s362_s25 = int_to_ptr.hbm [resolvable:$true] %s361_s25 }
  0x2b   : > { %v312_v11 = vpack.c.bf16 %v482_v9, %v482_v9  ;;  %s346_s15 = scalar_lea.sflag [#allocation4], %s849_s6  ;;  %s647_s26 = sshra.s32 %s362_s25, 4  ;;  %s648_s26 = int_to_ptr.hbm [resolvable:$true] %s647_s26 }
  0x2c   : > { %470 = vmatmul.msk.bf16.vlgmr.msra.gmra.mxu0 %vm242_vm0, %v232_v6  ;;  %475 = vmatmul.msk.bf16.vlgmr.msra.gmra.mxu1 %vm242_vm0, %v227_v7  ;;  %s649_s28 = scalar_lea.hbm %s648_s26, 4  ;;  %s653_s9 = scalar_lea.hbm %s906_s3, 8 }
  0x2d   : > { %481 = vmatmul.msk.bf16.vlgmr.msra.gmra.mxu2 %vm242_vm0, %v283_v10  ;;  %487 = vmatmul.msk.bf16.vlgmr.msra.gmra.mxu3 %vm242_vm0, %v312_v11  ;;  %p650_p1 = scmp.ne.s32.totalorder %s648_s26, %s649_s28  ;;  %p654_p10 = scmp.lt.s32.totalorder %s648_s26, %s906_s3 }
  0x2e   : > { %p655_p12 = scmp.lt.s32.totalorder %s653_s9, %s649_s28 }
  0x2f   : > { %p651_p4 = pnand %p650_p1, %p826_p5 }
  0x30   : > { %p656_p13 = por %p655_p12, %p654_p10 }
  0x31   : > { %p652_p8 = pneg %p651_p4 }
  0x33   : > { %p657_p0 = pnand %p656_p13, %p652_p8 }
  0xa9   : > { %v255_v12 = vpop.f32.mrf.mxu0  ;;  %v277_v13 = vpop.f32.mrf.mxu1 }
  0xaa   : > { %v278_v14 = vadd.f32 %v277_v13, %v255_v12 }
  0xb0   : > { %v305_v15 = vpop.f32.mrf.mxu2  ;;  %v334_v16 = vpop.f32.mrf.mxu3 }
  0xb1   : > { %v309_v17 = vadd.f32 %v305_v15, %v278_v14  ;;  %v257_v19 = vpop.f32.mrf.mxu0  ;;  %v279_v20 = vpop.f32.mrf.mxu1 }
  0xb3   : > { %v338_v21 = vadd.f32 %v334_v16, %v309_v17 }
  0xb5   : > { %v343_v22 = vadd.f32 %v572_v18, %v338_v21 }
  0xb7   : > { %344 = vst [vmem:[%s224_s10] sm:$0xf] %v343_v22 }
  0xb8   : > { %v307_v23 = vpop.f32.mrf.mxu2  ;;  %v336_v24 = vpop.f32.mrf.mxu3 }
  0xb9   : > { %660 = shalt.err (!%p657_p0)
}
  0xba   : > { %503 = dma.vmem_to_hbm [thread:$0]  (%p826_p5), %s360_s24, 64, %s362_s25, %s346_s15  }
  0xbb PF: > { %s373_s6 = sand.u32 1, %s699_s12   ;;  %p514_p3 = pnand %p457_p11, %p793_p6 }
  0xbc   : > { %s374_s1 = scalar_lea.sflag [#allocation4], %s373_s6 }
  0xbd   : > { %p515_p7 = pneg %p514_p3 }
  0xbf   : > { %694 = dma.done.wait (%p515_p7), %s374_s1, 64  }
  0xc0   : > { %696 = vsyncadd (%p515_p7), %s374_s1, 4294967232  ;;  %s20_s17 = sadd.s32 1, %s719_s17   ;;  %s918_s12 = smov %s703_s13 }
  0xc1   : > { %p17_p9 = scmp.ge.s32.totalorder %s20_s17, 4   ;;  %s919_s13 = smov %s707_s14 }
  0xc2   : > { %s920_s14 = smov %s835_s18  ;;  %s921_s15 = smov %s715_s16 }
  0xc3   : > { %s922_s16 = smov %s924_s5  ;;  %19 = sbr.rel (!%p17_p9) target bundleno = 9 (0x9), region = 87 }
  0xc8   :  { %380 = vsyncpa [#allocation3], 1 }
  0xc9   :  { %382 = vsyncpa [#allocation3 + $0x1], 1 }
  0xca   :  { %383 = vsyncpa [#allocation6], 1 }
  0xcb   :  { %384 = vsyncpa [#allocation4], 1 }
  0xcc   :  { %386 = vsyncpa [#allocation4 + $0x1], 1 }

</bundles_post_ra>
